<compile_context>
chip_gen: v5e
topology: v5e:2x2
jax: 0.10.0
libtpu: 0.0.40
codegen_flags: <defaults>
</compile_context>

<pallas_src>
import jax
import jax.numpy as jnp
from jax.experimental import pallas as pl
from jax.experimental.pallas import tpu as pltpu


def nima_kernel(x_ref, w1_ref, b1_ref, w2_ref, b2_ref, out_ref, acc_ref):
    # grid = (batch tiles [parallel], H*W tiles [arbitrary / reduction])
    j = pl.program_id(1)

    @pl.when(j == 0)
    def _init():
        acc_ref[...] = jnp.zeros_like(acc_ref)

    # Steady state: fold this (TB*C, THW) f32 tile into the lane-dense (TB*C, 128)
    # accumulator with pure VPU adds (no cross-lane reduce, no sublane-sparse writes),
    # so the DMA stream stays the binding resource.
    thw = x_ref.shape[1]
    for k in range(thw // 128):
        acc_ref[...] += x_ref[:, k * 128:(k + 1) * 128]

    @pl.when(j == pl.num_programs(1) - 1)
    def _finalize():
        n_ch = w1_ref.shape[0]        # C
        tb = out_ref.shape[0]         # batch tile

        # Per-channel GAP sums: channel c owns rows c, c+C, c+2C, ... of the accumulator
        # (static strided sublane read), one XLU lane-reduce each.  1/(H*W) is already
        # folded into w1, so the tiny-K (K=C) first layer is a VPU broadcast-MAC.
        h = None
        for c in range(n_ch):
            rows_c = acc_ref[pl.ds(c, tb, stride=n_ch), :]        # (TB, 128)
            feats_c = jnp.sum(rows_c, axis=-1, keepdims=True)     # (TB, 1)
            term = feats_c * w1_ref[c:c + 1, :]                   # (TB, F_pad)
            h = term if h is None else h + term
        h = jnp.maximum(h + b1_ref[...], 0.0)                     # bias + ReLU

        # NIMA head: Linear(1000 -> 10) padded to K=1024 / N=128; bf16 operands on the
        # MXU, f32 accumulation.
        logits = jnp.dot(h.astype(jnp.bfloat16), w2_ref[...],
                         preferred_element_type=jnp.float32) + b2_ref[...]  # (TB, 128)

        # Softmax over dim=1 (padded classes carry a -1e30 bias -> exp underflows to 0).
        m = jnp.max(logits, axis=-1, keepdims=True)
        e = jnp.exp(logits - m)
        s = jnp.sum(e, axis=-1, keepdims=True)
        out_ref[...] = e / s          # exact normalization (runs once per batch tile)


def _choose_batch_tile(B):
    """Batch tile: a multiple of 8 (dense sublanes in the finalize/output path), capped
    at 128, preferring >=2 tiles so the 'parallel' axis can shard over v7x's 2 TCs."""
    for tb in (128, 64, 32, 16, 8):
        if B % tb == 0 and B // tb >= 2:
            return tb
    if B % 8 == 0:
        return min(B, 128)
    # Tiny / odd batches: a full-dim block (TB == B) is still a legal layout; padding B
    # on the host would cost an extra copy of x for a marginal layout win.
    return B


def _choose_hw_tile(HW_pad, rows, budget_bytes=8 << 20):
    """Largest multiple-of-128 divisor of HW_pad whose *actual* sublane-padded f32 tile
    (rows x THW x 4B) fits one pipeline buffer's budget (~8 MiB)."""
    rows_pad = max(8, -(-rows // 8) * 8)
    t = HW_pad
    while t >= 128:
        if HW_pad % t == 0 and t % 128 == 0 and rows_pad * t * 4 <= budget_bytes:
            return t
        t -= 128
    return 128


def nima_forward(x, w1, b1, w2, b2, hw_tile=None):
    """x: (B, C, H, W) float32 -> (B, 10) float32 softmax scores."""
    B, C, H, W = x.shape
    HW = H * W
    F = w1.shape[1]                    # 1000 (base_model feature dim)
    N = w2.shape[1]                    # 10   (NIMA rating buckets)

    # ---- host-side layout prep ----
    # Stream f32 activations directly (no extra cast pass over HBM) in a dense
    # (B*C, HW_pad) layout: sublane dim = B*C rows, lane dim = H*W (padded to 128).
    HW_pad = -(-HW // 128) * 128
    x2 = x.reshape(B, C, HW)
    if HW_pad != HW:                   # e.g. 299x299 inputs; zero pixels don't change sums
        x2 = jnp.pad(x2, ((0, 0), (0, 0), (0, HW_pad - HW)))
    x2 = x2.reshape(B * C, HW_pad)

    F_pad = -(-F // 128) * 128         # 1000 -> 1024 (clean MXU K)
    N_pad = 128                        # 10 -> 128 (lane-dense output / clean MXU N)

    # Fold the 1/(H*W) GAP scale (true HW, not padded) into w1; zero-pad extra columns.
    w1p = jnp.zeros((C, F_pad), jnp.float32).at[:, :F].set(w1.astype(jnp.float32) / HW)
    b1p = jnp.zeros((1, F_pad), jnp.float32).at[:, :F].set(b1.astype(jnp.float32))
    # Head weights in bf16 (native MXU dtype, halves resident VMEM); biases stay f32.
    w2p = jnp.zeros((F_pad, N_pad), jnp.bfloat16).at[:F, :N].set(w2.astype(jnp.bfloat16))
    # Padded classes get -1e30 bias so exp() underflows to exactly 0 in the softmax.
    b2p = jnp.full((1, N_pad), -1e30, jnp.float32).at[0, :N].set(b2.astype(jnp.float32))

    # ---- tiling ----
    TB = _choose_batch_tile(B)
    THW = _choose_hw_tile(HW_pad, TB * C) if hw_tile is None else hw_tile
    assert B % TB == 0 and HW_pad % THW == 0 and THW % 128 == 0

    grid = (B // TB, HW_pad // THW)

    out = pl.pallas_call(
        nima_kernel,
        out_shape=jax.ShapeDtypeStruct((B, N_pad), jnp.float32),
        grid_spec=pltpu.PrefetchScalarGridSpec(
            num_scalar_prefetch=0,
            grid=grid,
            in_specs=[
                # streamed activations (f32), dense rows, tiled over batch and H*W
                pl.BlockSpec((TB * C, THW), lambda i, j: (i, j)),
                # weights/biases: constant index_map -> stay VMEM-resident
                # (pipeline_mode=pl.Buffered(1) would drop their second buffer; left at
                #  the default to stay on the best-supported path -- they total <0.6 MiB)
                pl.BlockSpec((C, F_pad), lambda i, j: (0, 0)),
                pl.BlockSpec((1, F_pad), lambda i, j: (0, 0)),
                pl.BlockSpec((F_pad, N_pad), lambda i, j: (0, 0)),
                pl.BlockSpec((1, N_pad), lambda i, j: (0, 0)),
            ],
            # same output block across the H*W axis -> resident until the finalize write
            out_specs=pl.BlockSpec((TB, N_pad), lambda i, j: (i, 0)),
            # lane-dense GAP partial sums
            scratch_shapes=[pltpu.VMEM((TB * C, 128), jnp.float32)],
        ),
        compiler_params=pltpu.CompilerParams(
            dimension_semantics=("parallel", "arbitrary"),
            vmem_limit_bytes=32 * 1024 * 1024),
    )(x2, w1p, b1p, w2p, b2p)

    return out[:, :N]


def _reference(x, w1, b1, w2, b2):
    feats = jnp.mean(x.reshape(x.shape[0], x.shape[1], -1), axis=-1)
    h = jnp.maximum(feats @ w1 + b1, 0.0)
    logits = h @ w2 + b2
    return jax.nn.softmax(logits, axis=1)


if __name__ == "__main__":
    key = jax.random.PRNGKey(0)
    k_x, k_w1, k_b1, k_w2, k_b2 = jax.random.split(key, 5)

    B, C, H, W = 2, 4, 16, 16
    NUM_FEATURES = 1000   # base_model output dim (matches nn.Linear(1000, 10) input)
    NUM_CLASSES = 10

    x = jax.random.normal(k_x, (B, C, H, W), dtype=jnp.float32)

    # Deterministic synthetic parameters.
    w1 = 0.05 * jax.random.normal(k_w1, (C, NUM_FEATURES), dtype=jnp.float32)
    b1 = 0.01 * jax.random.normal(k_b1, (NUM_FEATURES,), dtype=jnp.float32)
    w2 = 0.05 * jax.random.normal(k_w2, (NUM_FEATURES, NUM_CLASSES), dtype=jnp.float32)
    b2 = 0.01 * jax.random.normal(k_b2, (NUM_CLASSES,), dtype=jnp.float32)

    # hw_tile=128 -> 2 reduction steps over H*W = 256, exercising the pipelined
    # init / accumulate / finalize path (the default chooser would pick one full tile).
    out = nima_forward(x, w1, b1, w2, b2, hw_tile=128)
    out = jax.block_until_ready(out)

    ref = _reference(x, w1, b1, w2, b2)
    assert out.shape == (B, NUM_CLASSES)
    # f32 streaming + exact softmax normalization; only the bf16 head matmul adds error.
    assert jnp.allclose(out, ref, atol=2e-3, rtol=2e-3)
    # softmax rows sum to ~1 (exact divide -> only f32 rounding error)
    assert jnp.allclose(jnp.sum(out, axis=1), jnp.ones((B,)), atol=1e-3)

    print("KERNEL_OK")
</pallas_src>

<mosaic_0001>
module attributes {stable_mosaic.version = 11 : i64} {
  func.func @nima_kernel(%arg0: i32, %arg1: i32, %arg2: memref<8x128xf32, #tpu.memory_space<vmem>>, %arg3: memref<4x1024xf32, #tpu.memory_space<vmem>>, %arg4: memref<1x1024xf32, #tpu.memory_space<vmem>>, %arg5: memref<1024x128xbf16, #tpu.memory_space<vmem>>, %arg6: memref<1x128xf32, #tpu.memory_space<vmem>>, %arg7: memref<2x128xf32, #tpu.memory_space<vmem>>, %arg8: memref<8x128xf32, #tpu.memory_space<vmem>>) attributes {dimension_semantics = [#tpu.dimension_semantics<parallel>, #tpu.dimension_semantics<arbitrary>], iteration_bounds = array<i64: 1, 2>, scalar_prefetch = 0 : i64, scratch_operands = 1 : i64, tpu.core_type = #tpu.core_type<tc>, window_params = [{transform_indices = @transform_0, window_bounds = array<i64: 8, 128>}, {pipeline_mode = #tpu.pipeline_mode<synchronous>, transform_indices = @transform_1, window_bounds = array<i64: 4, 1024>}, {pipeline_mode = #tpu.pipeline_mode<synchronous>, transform_indices = @transform_2, window_bounds = array<i64: 1, 1024>}, {pipeline_mode = #tpu.pipeline_mode<synchronous>, transform_indices = @transform_3, window_bounds = array<i64: 1024, 128>}, {pipeline_mode = #tpu.pipeline_mode<synchronous>, transform_indices = @transform_4, window_bounds = array<i64: 1, 128>}, {transform_indices = @transform_5, window_bounds = array<i64: 2, 128>}]} {
    %c0_i32 = arith.constant 0 : i32
    %0 = arith.cmpi eq, %arg1, %c0_i32 : i32
    %1 = arith.extui %0 : i1 to i32
    %c0_i32_0 = arith.constant 0 : i32
    %2 = arith.cmpi ne, %1, %c0_i32_0 : i32
    scf.if %2 {
      %cst = arith.constant 0.000000e+00 : f32
      %10 = vector.broadcast %cst : f32 to vector<8x128xf32>
      %c0_7 = arith.constant 0 : index
      %c0_8 = arith.constant 0 : index
      %11 = vector.load %arg8[%c0_7, %c0_8] : memref<8x128xf32, #tpu.memory_space<vmem>>, vector<8x128xf32>
      tpu.vector_store %arg8[%c0_7, %c0_8], %10 {strides = array<i32>} : memref<8x128xf32, #tpu.memory_space<vmem>>, vector<8x128xf32>,
    } else {
    }
    %c0 = arith.constant 0 : index
    %c0_1 = arith.constant 0 : index
    %3 = vector.load %arg8[%c0, %c0_1] : memref<8x128xf32, #tpu.memory_space<vmem>>, vector<8x128xf32>
    %c0_2 = arith.constant 0 : index
    %c0_3 = arith.constant 0 : index
    %4 = vector.load %arg2[%c0_2, %c0_3] : memref<8x128xf32, #tpu.memory_space<vmem>>, vector<8x128xf32>
    %5 = arith.addf %3, %4 : vector<8x128xf32>
    %c0_4 = arith.constant 0 : index
    %c0_5 = arith.constant 0 : index
    %6 = vector.load %arg8[%c0_4, %c0_5] : memref<8x128xf32, #tpu.memory_space<vmem>>, vector<8x128xf32>
    tpu.vector_store %arg8[%c0_4, %c0_5], %5 {strides = array<i32>} : memref<8x128xf32, #tpu.memory_space<vmem>>, vector<8x128xf32>,
    %c1_i32 = arith.constant 1 : i32
    %7 = arith.cmpi eq, %arg1, %c1_i32 : i32
    %8 = arith.extui %7 : i1 to i32
    %c0_i32_6 = arith.constant 0 : i32
    %9 = arith.cmpi ne, %8, %c0_i32_6 : i32
    scf.if %9 {
      %c0_7 = arith.constant 0 : index
      %c0_8 = arith.constant 0 : index
      %10 = tpu.strided_load %arg8[%c0_7, %c0_8] {strides = array<i32: 4, 1>} : memref<8x128xf32, #tpu.memory_space<vmem>>, vector<2x128xf32>
      %cst = arith.constant dense<0.000000e+00> : vector<2xf32>
      %11 = vector.multi_reduction <add>, %10, %cst [1] : vector<2x128xf32> to vector<2xf32>
      %12 = vector.shape_cast %11 : vector<2xf32> to vector<2x1xf32>
      %c0_9 = arith.constant 0 : index
      %c0_10 = arith.constant 0 : index
      %13 = vector.load %arg3[%c0_9, %c0_10] : memref<4x1024xf32, #tpu.memory_space<vmem>>, vector<1x1024xf32>
      %14 = vector.broadcast %12 : vector<2x1xf32> to vector<2x1024xf32>
      %15 = vector.broadcast %13 : vector<1x1024xf32> to vector<2x1024xf32>
      %16 = arith.mulf %14, %15 : vector<2x1024xf32>
      %c1 = arith.constant 1 : index
      %c0_11 = arith.constant 0 : index
      %17 = tpu.strided_load %arg8[%c1, %c0_11] {strides = array<i32: 4, 1>} : memref<8x128xf32, #tpu.memory_space<vmem>>, vector<2x128xf32>
      %cst_12 = arith.constant dense<0.000000e+00> : vector<2xf32>
      %18 = vector.multi_reduction <add>, %17, %cst_12 [1] : vector<2x128xf32> to vector<2xf32>
      %19 = vector.shape_cast %18 : vector<2xf32> to vector<2x1xf32>
      %c1_13 = arith.constant 1 : index
      %c0_14 = arith.constant 0 : index
      %20 = vector.load %arg3[%c1_13, %c0_14] : memref<4x1024xf32, #tpu.memory_space<vmem>>, vector<1x1024xf32>
      %21 = vector.broadcast %19 : vector<2x1xf32> to vector<2x1024xf32>
      %22 = vector.broadcast %20 : vector<1x1024xf32> to vector<2x1024xf32>
      %23 = arith.mulf %21, %22 : vector<2x1024xf32>
      %24 = arith.addf %16, %23 : vector<2x1024xf32>
      %c2 = arith.constant 2 : index
      %c0_15 = arith.constant 0 : index
      %25 = tpu.strided_load %arg8[%c2, %c0_15] {strides = array<i32: 4, 1>} : memref<8x128xf32, #tpu.memory_space<vmem>>, vector<2x128xf32>
      %cst_16 = arith.constant dense<0.000000e+00> : vector<2xf32>
      %26 = vector.multi_reduction <add>, %25, %cst_16 [1] : vector<2x128xf32> to vector<2xf32>
      %27 = vector.shape_cast %26 : vector<2xf32> to vector<2x1xf32>
      %c2_17 = arith.constant 2 : index
      %c0_18 = arith.constant 0 : index
      %28 = vector.load %arg3[%c2_17, %c0_18] : memref<4x1024xf32, #tpu.memory_space<vmem>>, vector<1x1024xf32>
      %29 = vector.broadcast %27 : vector<2x1xf32> to vector<2x1024xf32>
      %30 = vector.broadcast %28 : vector<1x1024xf32> to vector<2x1024xf32>
      %31 = arith.mulf %29, %30 : vector<2x1024xf32>
      %32 = arith.addf %24, %31 : vector<2x1024xf32>
      %c3 = arith.constant 3 : index
      %c0_19 = arith.constant 0 : index
      %33 = tpu.strided_load %arg8[%c3, %c0_19] {strides = array<i32: 4, 1>} : memref<8x128xf32, #tpu.memory_space<vmem>>, vector<2x128xf32>
      %cst_20 = arith.constant dense<0.000000e+00> : vector<2xf32>
      %34 = vector.multi_reduction <add>, %33, %cst_20 [1] : vector<2x128xf32> to vector<2xf32>
      %35 = vector.shape_cast %34 : vector<2xf32> to vector<2x1xf32>
      %c3_21 = arith.constant 3 : index
      %c0_22 = arith.constant 0 : index
      %36 = vector.load %arg3[%c3_21, %c0_22] : memref<4x1024xf32, #tpu.memory_space<vmem>>, vector<1x1024xf32>
      %37 = vector.broadcast %35 : vector<2x1xf32> to vector<2x1024xf32>
      %38 = vector.broadcast %36 : vector<1x1024xf32> to vector<2x1024xf32>
      %39 = arith.mulf %37, %38 : vector<2x1024xf32>
      %40 = arith.addf %32, %39 : vector<2x1024xf32>
      %c0_23 = arith.constant 0 : index
      %c0_24 = arith.constant 0 : index
      %41 = vector.load %arg4[%c0_23, %c0_24] : memref<1x1024xf32, #tpu.memory_space<vmem>>, vector<1x1024xf32>
      %42 = vector.broadcast %41 : vector<1x1024xf32> to vector<2x1024xf32>
      %43 = arith.addf %40, %42 : vector<2x1024xf32>
      %cst_25 = arith.constant 0.000000e+00 : f32
      %44 = vector.broadcast %cst_25 : f32 to vector<2x1024xf32>
      %45 = arith.maximumf %43, %44 : vector<2x1024xf32>
      %46 = arith.truncf %45 : vector<2x1024xf32> to vector<2x1024xbf16>
      %c0_26 = arith.constant 0 : index
      %c0_27 = arith.constant 0 : index
      %47 = vector.load %arg5[%c0_26, %c0_27] : memref<1024x128xbf16, #tpu.memory_space<vmem>>, vector<1024x128xbf16>
      %cst_28 = arith.constant dense<0.000000e+00> : vector<2x128xf32>
      %48 = tpu.matmul %46, %47, %cst_28 {dimension_numbers = #tpu.dot_dimension_numbers<[1], [0], [0], [1], [0, 0, 1, 1], [], []>} : vector<2x1024xbf16>, vector<1024x128xbf16>, vector<2x128xf32> -> vector<2x128xf32>
      %c0_29 = arith.constant 0 : index
      %c0_30 = arith.constant 0 : index
      %49 = vector.load %arg6[%c0_29, %c0_30] : memref<1x128xf32, #tpu.memory_space<vmem>>, vector<1x128xf32>
      %50 = vector.broadcast %49 : vector<1x128xf32> to vector<2x128xf32>
      %51 = arith.addf %48, %50 : vector<2x128xf32>
      %cst_31 = arith.constant dense<0xFF800000> : vector<2xf32>
      %52 = vector.multi_reduction <maximumf>, %51, %cst_31 [1] : vector<2x128xf32> to vector<2xf32>
      %53 = vector.shape_cast %52 : vector<2xf32> to vector<2x1xf32>
      %54 = vector.broadcast %53 : vector<2x1xf32> to vector<2x128xf32>
      %55 = arith.subf %51, %54 : vector<2x128xf32>
      %56 = math.exp %55 : vector<2x128xf32>
      %cst_32 = arith.constant dense<0.000000e+00> : vector<2xf32>
      %57 = vector.multi_reduction <add>, %56, %cst_32 [1] : vector<2x128xf32> to vector<2xf32>
      %58 = vector.shape_cast %57 : vector<2xf32> to vector<2x1xf32>
      %59 = vector.broadcast %58 : vector<2x1xf32> to vector<2x128xf32>
      %60 = arith.divf %56, %59 : vector<2x128xf32>
      %c0_33 = arith.constant 0 : index
      %c0_34 = arith.constant 0 : index
      %61 = vector.load %arg7[%c0_33, %c0_34] : memref<2x128xf32, #tpu.memory_space<vmem>>, vector<2x128xf32>
      tpu.vector_store %arg7[%c0_33, %c0_34], %60 {strides = array<i32>} : memref<2x128xf32, #tpu.memory_space<vmem>>, vector<2x128xf32>,
    } else {
    }
    return
  }
  func.func @transform_0(%arg0: i32, %arg1: i32) -> (i32, i32) {
    %c0_i32 = arith.constant 0 : i32
    return %arg0, %arg1 : i32, i32
  }
  func.func @transform_1(%arg0: i32, %arg1: i32) -> (i32, i32) {
    %c0_i32 = arith.constant 0 : i32
    %c0_i32_0 = arith.constant 0 : i32
    %c0_i32_1 = arith.constant 0 : i32
    return %c0_i32, %c0_i32_0 : i32, i32
  }
  func.func @transform_2(%arg0: i32, %arg1: i32) -> (i32, i32) {
    %c0_i32 = arith.constant 0 : i32
    %c0_i32_0 = arith.constant 0 : i32
    %c0_i32_1 = arith.constant 0 : i32
    return %c0_i32, %c0_i32_0 : i32, i32
  }
  func.func @transform_3(%arg0: i32, %arg1: i32) -> (i32, i32) {
    %c0_i32 = arith.constant 0 : i32
    %c0_i32_0 = arith.constant 0 : i32
    %c0_i32_1 = arith.constant 0 : i32
    return %c0_i32, %c0_i32_0 : i32, i32
  }
  func.func @transform_4(%arg0: i32, %arg1: i32) -> (i32, i32) {
    %c0_i32 = arith.constant 0 : i32
    %c0_i32_0 = arith.constant 0 : i32
    %c0_i32_1 = arith.constant 0 : i32
    return %c0_i32, %c0_i32_0 : i32, i32
  }
  func.func @transform_5(%arg0: i32, %arg1: i32) -> (i32, i32) {
    %c0_i32 = arith.constant 0 : i32
    %c0_i32_0 = arith.constant 0 : i32
    return %arg0, %c0_i32 : i32, i32
  }
}

</mosaic_0001>

<bundles_post_ra>
// kernel: tpu_custom_call.1
= control target key start
LH: loop header
LB: loop body
LE: loop exit
PB: predicated region body
PF: predicated region fallthrough
CT: control target
= control target key end

     0   :  { %10 = vsyncpa [#allocation4], 0  ;;  %s2172_s0 = inlined_call_operand.hbm [shape: f32[8,256], index: 0, kind: input, shape index: {}]   ;;  %s2173_s1 = inlined_call_operand.hbm [shape: f32[4,1024], index: 1, kind: input, shape index: {}]   ;;  %s2174_s2 = inlined_call_operand.hbm [shape: f32[1,1024], index: 2, kind: input, shape index: {}]   ;;  %s2175_s3 = inlined_call_operand.hbm [shape: bf16[1024,128], index: 3, kind: input, shape index: {}]   ;;  %s2176_s4 = inlined_call_operand.vmem [shape: f32[1,128], index: 4, kind: input, shape index: {}]   ;;  %s2177_s5 = inlined_call_operand.hbm [shape: f32[2,128], index: 5, kind: output, shape index: {}]  }
   0x1   :  { %12 = vsyncpa [#allocation4 + $0x1], 0 }
   0x2   :  { %13 = vsyncpa [#allocation7], 0 }
   0x3   :  { %14 = vsyncpa [#allocation10], 0 }
   0x4   :  { %15 = vsyncpa [#allocation5], 0  ;;  %s1940_s18 = smov 0   ;;  %s1942_s19 = smov 0  }
   0x5   :  { %s1944_s20 = smov 0   ;;  %s1946_s21 = smov 0  }
   0x6   :  { %s1948_s22 = smov 0   ;;  %s1950_s23 = smov 0  }
   0x7 LB: > { %s1251_s24 = sadd.s32 4294967295, %s1901_s23   ;;  %p55_p0 = scmp.ne.s32.totalorder %s1885_s19, %s1881_s18  ;;  %s1901_s23 = sphi %s1950_s23, %s21_s23   ;;  %s1897_s22 = sphi %s1948_s22, %s2186_s22   ;;  %s1893_s21 = sphi %s1946_s21, %s2185_s21   ;;  %s1889_s20 = sphi %s1944_s20, %s2184_s20   ;;  %s1885_s19 = sphi %s1942_s19, %s2183_s19   ;;  %s1881_s18 = sphi %s1940_s18, %s2182_s18  }
   0x8   : > { %p1972_p1 = scmp.eq.s32.totalorder %s1251_s24, 0  ;;  %p1252_p2 = scmp.ge.s32.totalorder %s1901_s23, 1 }
   0x9   : > { %p176_p3 = scmp.lt.s32.totalorder %s1901_s23, 3  ;;  %s188_s29 = sshll.u32 %s2173_s1, 4  ;;  %s189_s29 = int_to_ptr.hbm [resolvable:$true] %s188_s29 }
   0xa   : > { %p1980_p4 = por %p1972_p1, %p55_p0  ;;  %s1903_s6 = smov [#allocation6]  }
   0xb   : > { %p1987_p5 = pnand %p1252_p2, %p176_p3  ;;  %s190_s7 = sshll.u32 %s1903_s6, 4  ;;  %s191_s7 = int_to_ptr.vmem [resolvable:$true] %s190_s7 }
   0xc   : > { %s200_s10 = sshll.u32 %s2174_s2, 4  ;;  %s211_s14 = sshll.u32 %s2175_s3, 4  ;;  %s201_s10 = int_to_ptr.hbm [resolvable:$true] %s200_s10  ;;  %s212_s14 = int_to_ptr.hbm [resolvable:$true] %s211_s14 }
   0xd   : > { %p1608_p6 = pneg %p1987_p5  ;;  %s1904_s15 = smov [#allocation8]  }
   0xe   : > { %s202_s16 = sshll.u32 %s1904_s15, 4  ;;  %s1905_s17 = smov [#allocation9]   ;;  %s203_s16 = int_to_ptr.vmem [resolvable:$true] %s202_s16 }
   0xf   : > { %p1998_p7 = pnand %p1608_p6, %p1972_p1  ;;  %s213_s18 = sshll.u32 %s1905_s17, 4  ;;  %s214_s18 = int_to_ptr.vmem [resolvable:$true] %s213_s18 }
  0x10   : > { %s1906_s27 = smov 64   ;;  %s1907_s28 = smov 4  }
  0x11   : > { %1611 = dma.hbm_to_vmem [thread:$0]  (!%p1998_p7), %s189_s29, 512, %s191_s7, [#allocation7]  }
  0x12   : > { %1614 = dma.hbm_to_vmem [thread:$0]  (!%p1998_p7), %s201_s10, 128, %s203_s16, [#allocation7]  }
  0x13   : > { %1617 = dma.hbm_to_vmem [thread:$0]  (!%p1998_p7), %s212_s14, 8192, %s214_s18, [#allocation10], %s1906_s27, %s1906_s27, %s1907_s28  }
  0x14   : > { %s42_s6 = sadd.s32 1, %s1889_s20  ;;  %s30_s8 = sadd.s32 1, %s1897_s22 }
  0x15   : > { %p49_p8 = scmp.ne.s32.totalorder %s1889_s20, %s1885_s19  ;;  %p31_p9 = scmp.ge.s32.totalorder %s30_s8, 2 }
  0x16   : > { %p50_p10 = scmp.eq.s32.totalorder %s1901_s23, 0  ;;  %p1625_p11 = scmp.lt.s32.totalorder %s1901_s23, 2 }
  0x17   : > { %s230_s29 = sand.u32 1, %s1889_s20   ;;  %s2188_s8 = smov (%p31_p9, %s30_s8), 0 }
  0x18   : > { %p51_p12 = por %p50_p10, %p49_p8  ;;  %s38_s7 = ssub.s32 %s1897_s22, %s2188_s8 }
  0x19   : > { %s1257_s9 = sshll.u32 %s230_s29, 3  ;;  %p40_p13 = scmp.eq.s32.totalorder %s38_s7, 0 }
  0x1a   : > { %s1258_s10 = sshll.u32 %s1897_s22, 3  ;;  %s234_s12 = scalar_lea.vmem [#allocation3], %s1257_s9 }
  0x1b   : > { %s244_s11 = sshll.u32 %s234_s12, 4  ;;  %s240_s16 = scalar_lea.hbm %s2172_s0, %s1258_s10  ;;  %s245_s11 = int_to_ptr.vmem [resolvable:$true] %s244_s11 }
  0x1c   : > { %s2024_s13 = scalar_select %p40_p13, %s1889_s20, %s42_s6  }
  0x1d   : > { %s242_s17 = sshll.u32 %s240_s16, 4  ;;  %p1619_p0 = pnand %p1625_p11, %p51_p12  ;;  %s243_s17 = int_to_ptr.hbm [resolvable:$true] %s242_s17 }
  0x1e   : > { %s231_s18 = scalar_lea.sflag [#allocation4], %s230_s29  ;;  %253 = sbr.rel (%p1987_p5) target bundleno = 629 (0x275), region = 40 }
  0x1f   : > { %1621 = dma.hbm_to_vmem [thread:$0]  (!%p1619_p0), %s243_s17, 128, %s245_s11, %s231_s18  }
  0x20   : > { %s255_s27 = sand.u32 (!%p1987_p5), 1, %s1885_s19  }
  0x21   : > { %s1260_s28 = sshll.u32 (!%p1987_p5), %s255_s27, 3  ;;  %s256_s6 = scalar_lea.sflag (!%p1987_p5), [#allocation4], %s255_s27 }
  0x22   : > { %s259_s7 = scalar_lea.vmem (!%p1987_p5), [#allocation3], %s1260_s28 }
  0x23   : > { %1864 = dma.done.wait (%p1980_p4), %s256_s6, 128  }
  0x24   : > { %1866 = vsyncadd (%p1980_p4), %s256_s6, 4294967168 }
  0x25   : > { %1868 = dma.done.wait (%p1972_p1), [#allocation7], 640  }
  0x26   : > { %1870 = vsyncadd (%p1972_p1), [#allocation7], 4294966656 }
  0x27   : > { %1872 = dma.done.wait (%p1972_p1), [#allocation10], 8192  }
  0x28   : > { %1874 = vsyncadd (%p1972_p1), [#allocation10], 4294959104  ;;  %p1264_p2 = scmp.ne.s32.totalorder %s1893_s21, 0 }
  0x2a   : > { %300 = sbr.rel (%p1264_p2) target bundleno = 49 (0x31), region = 60 }
  0x2f   : > { %v1908_v0 = vmov 0.0  }
  0x30   : > { %301 = vst [vmem:[#allocation2] sm:$0xff] %v1908_v0 }
  0x31 PF: > { %v303_v2 = vld [vmem:[%s259_s7] sm:$0xff]  ;;  %p1265_p3 = scmp.ne.s32.totalorder %s1893_s21, 1 }
  0x36   : > { %309 = sbr.rel (%p1265_p3) target bundleno = 623 (0x26f), region = 64 }
  0x37   : > { %v302_v1 = vld [vmem:[#allocation2] sm:$0xff] }
  0x38   : > { %v304_v3 = vadd.f32 %v303_v2, %v302_v1 }
  0x3a   : > { %305 = vst [vmem:[#allocation2] sm:$0xff] %v304_v3 }
  0x3b   : > { %vm311_vm0 = vcmask 1041408   ;;  %v1533_v5 = vld [vmem:[#allocation9 + $0x38] sm:$0xff]  ;;  %v1532_v12 = vld [vmem:[#allocation9 + $0x30] sm:$0xff]  ;;  %v1531_v18 = vld [vmem:[#allocation9 + $0x28] sm:$0xff] }
  0x3c   : > { %v1541_v6 = vld [vmem:[#allocation9 + $0x78] sm:$0xff]  ;;  %1019 = vmatpush.bf16.msra.mxu0 %v1533_v5  ;;  %v1540_v13 = vld [vmem:[#allocation9 + $0x70] sm:$0xff]  ;;  %v1539_v20 = vld [vmem:[#allocation9 + $0x68] sm:$0xff] }
  0x3d   : > { %v1549_v9 = vld [vmem:[#allocation9 + $0xb8] sm:$0xff]  ;;  %1032 = vmatpush.bf16.msra.mxu1 %v1541_v6  ;;  %v1548_v15 = vld [vmem:[#allocation9 + $0xb0] sm:$0xff]  ;;  %v1547_v22 = vld [vmem:[#allocation9 + $0xa8] sm:$0xff] }
  0x3e   : > { %v1557_v10 = vld [vmem:[#allocation9 + $0xf8] sm:$0xff]  ;;  %1045 = vmatpush.bf16.msra.mxu2 %v1549_v9  ;;  %v1556_v16 = vld [vmem:[#allocation9 + $0xf0] sm:$0xff]  ;;  %v1555_v23 = vld [vmem:[#allocation9 + $0xe8] sm:$0xff] }
  0x3f   : > { %1058 = vmatpush.bf16.msra.mxu3 %v1557_v10  ;;  %v1530_v24 = vld [vmem:[#allocation9 + $0x20] sm:$0xff]  ;;  %v1529_v28 = vld [vmem:[#allocation9 + $0x18] sm:$0xff]  ;;  %v1528_v32 = vld [vmem:[#allocation9 + $0x10] sm:$0xff] }
  0x40   : > { %1020 = vmatpush.bf16.msra.mxu0 %v1532_v12  ;;  %v1538_v25 = vld [vmem:[#allocation9 + $0x60] sm:$0xff]  ;;  %v1537_v29 = vld [vmem:[#allocation9 + $0x58] sm:$0xff]  ;;  %v1536_v33 = vld [vmem:[#allocation9 + $0x50] sm:$0xff] }
  0x41   : > { %v310_v4 = vld [vmem:[#allocation2] ss:$4 sm:$0x3]  ;;  %v382_v8 = vld [vmem:[#allocation2 + $0x2] ss:$4 sm:$0x3]  ;;  %1033 = vmatpush.bf16.msra.mxu1 %v1540_v13 }
  0x42   : > { %v312_v7 = vsel %vm311_vm0, %v310_v4, 0.0  ;;  %v383_v11 = vsel %vm311_vm0, %v382_v8, 0.0  ;;  %v342_v14 = vld [vmem:[#allocation2 + $0x1] ss:$4 sm:$0x3]  ;;  %1046 = vmatpush.bf16.msra.mxu2 %v1548_v15  ;;  %v1545_v30 = vld [vmem:[#allocation9 + $0x98] sm:$0xff] }
  0x43   : > { %313 = vadd.xlane.f32.xlu0 %v312_v7  ;;  %384 = vadd.xlane.f32.xlu1 %v383_v11  ;;  %v422_v17 = vld [vmem:[#allocation2 + $0x3] ss:$4 sm:$0x3]  ;;  %v343_v19 = vsel %vm311_vm0, %v342_v14, 0.0  ;;  %v1553_v31 = vld [vmem:[#allocation9 + $0xd8] sm:$0xff]  ;;  %v1544_v34 = vld [vmem:[#allocation9 + $0x90] sm:$0xff] }
  0x44   : > { %v423_v21 = vsel %vm311_vm0, %v422_v17, 0.0  ;;  %1059 = vmatpush.bf16.msra.mxu3 %v1556_v16  ;;  %1021 = vmatpush.bf16.msra.mxu0 %v1531_v18  ;;  %v1546_v26 = vld [vmem:[#allocation9 + $0xa0] sm:$0xff]  ;;  %v1552_v35 = vld [vmem:[#allocation9 + $0xd0] sm:$0xff]  ;;  %v1527_v36 = vld [vmem:[#allocation9 + $0x8] sm:$0xff] }
  0x45   : > { %1034 = vmatpush.bf16.msra.mxu1 %v1539_v20  ;;  %v1554_v27 = vld [vmem:[#allocation9 + $0xe0] sm:$0xff]  ;;  %v1535_v37 = vld [vmem:[#allocation9 + $0x48] sm:$0xff]  ;;  %v1565_v44 = vld [vmem:[#allocation9 + $0x138] sm:$0xff] }
  0x46   : > { %1047 = vmatpush.bf16.msra.mxu2 %v1547_v22  ;;  %v1543_v38 = vld [vmem:[#allocation9 + $0x88] sm:$0xff]  ;;  %v1526_v40 = vld [vmem:[#allocation9] sm:$0xff]  ;;  %v1573_v45 = vld [vmem:[#allocation9 + $0x178] sm:$0xff] }
  0x47   : > { %v1551_v39 = vld [vmem:[#allocation9 + $0xc8] sm:$0xff]  ;;  %v1534_v41 = vld [vmem:[#allocation9 + $0x40] sm:$0xff]  ;;  %v1581_v46 = vld [vmem:[#allocation9 + $0x1b8] sm:$0xff] }
  0x48   : > { %1060 = vmatpush.bf16.msra.mxu3 %v1555_v23  ;;  %1022 = vmatpush.bf16.msra.mxu0 %v1530_v24  ;;  %v1542_v42 = vld [vmem:[#allocation9 + $0x80] sm:$0xff]  ;;  %v1589_v47 = vld [vmem:[#allocation9 + $0x1f8] sm:$0xff]  ;;  %v1564_v48 = vld [vmem:[#allocation9 + $0x130] sm:$0xff] }
  0x49   : > { %1035 = vmatpush.bf16.msra.mxu1 %v1538_v25  ;;  %v1550_v43 = vld [vmem:[#allocation9 + $0xc0] sm:$0xff]  ;;  %v1572_v49 = vld [vmem:[#allocation9 + $0x170] sm:$0xff]  ;;  %v1563_v52 = vld [vmem:[#allocation9 + $0x128] sm:$0xff] }
  0x4a   : > { %1048 = vmatpush.bf16.msra.mxu2 %v1546_v26  ;;  %v1580_v50 = vld [vmem:[#allocation9 + $0x1b0] sm:$0xff]  ;;  %v1571_v53 = vld [vmem:[#allocation9 + $0x168] sm:$0xff]  ;;  %v1562_v56 = vld [vmem:[#allocation9 + $0x120] sm:$0xff] }
  0x4b   : > { %344 = vadd.xlane.f32.xlu0 %v343_v19  ;;  %424 = vadd.xlane.f32.xlu1 %v423_v21  ;;  %v1588_v51 = vld [vmem:[#allocation9 + $0x1f0] sm:$0xff]  ;;  %v1579_v54 = vld [vmem:[#allocation9 + $0x1a8] sm:$0xff]  ;;  %v1570_v57 = vld [vmem:[#allocation9 + $0x160] sm:$0xff] }
  0x4c   : > { %1061 = vmatpush.bf16.msra.mxu3 %v1554_v27  ;;  %1023 = vmatpush.bf16.msra.mxu0 %v1529_v28  ;;  %v1587_v55 = vld [vmem:[#allocation9 + $0x1e8] sm:$0xff]  ;;  %v1578_v58 = vld [vmem:[#allocation9 + $0x1a0] sm:$0xff]  ;;  %v1561_v60 = vld [vmem:[#allocation9 + $0x118] sm:$0xff] }
  0x4d   : > { %1036 = vmatpush.bf16.msra.mxu1 %v1537_v29  ;;  %v1586_v59 = vld [vmem:[#allocation9 + $0x1e0] sm:$0xff]  ;;  %v1569_v61 = vld [vmem:[#allocation9 + $0x158] sm:$0xff]  ;;  %v1560_v0 = vld [vmem:[#allocation9 + $0x110] sm:$0xff] }
  0x4e   : > { %1049 = vmatpush.bf16.msra.mxu2 %v1545_v30  ;;  %v1577_v62 = vld [vmem:[#allocation9 + $0x198] sm:$0xff]  ;;  %v1568_v1 = vld [vmem:[#allocation9 + $0x150] sm:$0xff]  ;;  %v1559_v8 = vld [vmem:[#allocation9 + $0x108] sm:$0xff] }
  0x4f   : > { %v1585_v63 = vld [vmem:[#allocation9 + $0x1d8] sm:$0xff]  ;;  %v1576_v3 = vld [vmem:[#allocation9 + $0x190] sm:$0xff]  ;;  %v1567_v12 = vld [vmem:[#allocation9 + $0x148] sm:$0xff] }
  0x50   : > { %1062 = vmatpush.bf16.msra.mxu3 %v1553_v31  ;;  %1024 = vmatpush.bf16.msra.mxu0 %v1528_v32  ;;  %v2052_v2 = vld [vmem:[#allocation6] ss:$4 sm:$0xff]  ;;  %v2054_v5 = vld [vmem:[#allocation6 + $0x2] ss:$4 sm:$0xff]  ;;  %v2058_v9 = vld [vmem:[#allocation6 + $0x1] ss:$4 sm:$0xff] }
  0x51   : > { %1037 = vmatpush.bf16.msra.mxu1 %v1536_v33  ;;  %v1584_v4 = vld [vmem:[#allocation9 + $0x1d0] sm:$0xff]  ;;  %v317_v6 = vperm.slane %v2052_v2, 0  ;;  %v318_v7 = vperm.slane %v2052_v2, 1  ;;  %v319_v10 = vperm.slane %v2052_v2, 2  ;;  %v320_v11 = vperm.slane %v2052_v2, 3  ;;  %v1575_v15 = vld [vmem:[#allocation9 + $0x188] sm:$0xff] }
  0x52   : > { %1050 = vmatpush.bf16.msra.mxu2 %v1544_v34  ;;  %v321_v13 = vperm.slane %v2052_v2, 4  ;;  %v389_v14 = vperm.slane %v2054_v5, 0  ;;  %v1583_v16 = vld [vmem:[#allocation9 + $0x1c8] sm:$0xff]  ;;  %v322_v17 = vperm.slane %v2052_v2, 5  ;;  %v323_v18 = vperm.slane %v2052_v2, 6  ;;  %v1558_v29 = vld [vmem:[#allocation9 + $0x100] sm:$0xff] }
  0x53   : > { %v324_v19 = vperm.slane %v2052_v2, 7  ;;  %v390_v21 = vperm.slane %v2054_v5, 1  ;;  %v391_v22 = vperm.slane %v2054_v5, 2  ;;  %v392_v23 = vperm.slane %v2054_v5, 3  ;;  %v2076_v27 = vld [vmem:[#allocation6 + $0x3] ss:$4 sm:$0xff] }
  0x54   : > { %1063 = vmatpush.bf16.msra.mxu3 %v1552_v35  ;;  %1025 = vmatpush.bf16.msra.mxu0 %v1527_v36  ;;  %v393_v24 = vperm.slane %v2054_v5, 4  ;;  %v349_v26 = vperm.slane %v2058_v9, 0  ;;  %v350_v28 = vperm.slane %v2058_v9, 1  ;;  %v394_v30 = vperm.slane %v2054_v5, 5  ;;  %v2080_v31 = vld [vmem:[#allocation8] sm:$0xff]  ;;  %v1566_v34 = vld [vmem:[#allocation9 + $0x140] sm:$0xff] }
  0x55   : > { %1038 = vmatpush.bf16.msra.mxu1 %v1535_v37  ;;  %v351_v32 = vperm.slane %v2058_v9, 2  ;;  %v352_v33 = vperm.slane %v2058_v9, 3  ;;  %v353_v35 = vperm.slane %v2058_v9, 4  ;;  %v395_v36 = vperm.slane %v2054_v5, 6  ;;  %v1574_v37 = vld [vmem:[#allocation9 + $0x180] sm:$0xff] }
  0x56   : > { %1051 = vmatpush.bf16.msra.mxu2 %v1543_v38  ;;  %v1582_v38 = vld [vmem:[#allocation9 + $0x1c0] sm:$0xff] }
  0x58   : > { %1064 = vmatpush.bf16.msra.mxu3 %v1551_v39  ;;  %1026 = vmatpush.bf16.msra.mxu0 %v1526_v40  ;;  %v354_v39 = vperm.slane %v2058_v9, 5  ;;  %v355_v40 = vperm.slane %v2058_v9, 6 }
  0x59   : > { %1039 = vmatpush.bf16.msra.mxu1 %v1534_v41  ;;  %v356_v41 = vperm.slane %v2058_v9, 7 }
  0x5a   : > { %1052 = vmatpush.bf16.msra.mxu2 %v1542_v42  ;;  %v396_v42 = vperm.slane %v2054_v5, 7 }
  0x5c   : > { %1065 = vmatpush.bf16.msra.mxu3 %v1550_v43  ;;  %1071 = vmatpush.bf16.msrb.mxu0 %v1565_v44  ;;  %v429_v43 = vperm.slane %v2076_v27, 0  ;;  %v430_v44 = vperm.slane %v2076_v27, 1 }
  0x5d   : > { %1084 = vmatpush.bf16.msrb.mxu1 %v1573_v45  ;;  %v431_v45 = vperm.slane %v2076_v27, 2 }
  0x5e   : > { %1097 = vmatpush.bf16.msrb.mxu2 %v1581_v46  ;;  %v432_v46 = vperm.slane %v2076_v27, 3 }
  0x60   : > { %1110 = vmatpush.bf16.msrb.mxu3 %v1589_v47  ;;  %1072 = vmatpush.bf16.msrb.mxu0 %v1564_v48  ;;  %v463_v47 = vperm.slane %v2080_v31, 0  ;;  %v464_v48 = vperm.slane %v2080_v31, 1 }
  0x61   : > { %1085 = vmatpush.bf16.msrb.mxu1 %v1572_v49  ;;  %v433_v49 = vperm.slane %v2076_v27, 4 }
  0x62   : > { %1098 = vmatpush.bf16.msrb.mxu2 %v1580_v50  ;;  %v434_v50 = vperm.slane %v2076_v27, 5 }
  0x64   : > { %1111 = vmatpush.bf16.msrb.mxu3 %v1588_v51  ;;  %1073 = vmatpush.bf16.msrb.mxu0 %v1563_v52  ;;  %v465_v52 = vperm.slane %v2080_v31, 2 }
  0x65   : > { %1086 = vmatpush.bf16.msrb.mxu1 %v1571_v53  ;;  %v466_v53 = vperm.slane %v2080_v31, 3 }
  0x66   : > { %1099 = vmatpush.bf16.msrb.mxu2 %v1579_v54  ;;  %v435_v54 = vperm.slane %v2076_v27, 6 }
  0x68   : > { %1112 = vmatpush.bf16.msrb.mxu3 %v1587_v55  ;;  %1074 = vmatpush.bf16.msrb.mxu0 %v1562_v56 }
  0x69   : > { %1087 = vmatpush.bf16.msrb.mxu1 %v1570_v57 }
  0x6a   : > { %1100 = vmatpush.bf16.msrb.mxu2 %v1578_v58  ;;  %v436_v58 = vperm.slane %v2076_v27, 7 }
  0x6c   : > { %1113 = vmatpush.bf16.msrb.mxu3 %v1586_v59  ;;  %1075 = vmatpush.bf16.msrb.mxu0 %v1561_v60 }
  0x6d   : > { %1088 = vmatpush.bf16.msrb.mxu1 %v1569_v61 }
  0x6e   : > { %1101 = vmatpush.bf16.msrb.mxu2 %v1577_v62 }
  0x70   : > { %1114 = vmatpush.bf16.msrb.mxu3 %v1585_v63  ;;  %1076 = vmatpush.bf16.msrb.mxu0 %v1560_v0 }
  0x71   : > { %1089 = vmatpush.bf16.msrb.mxu1 %v1568_v1 }
  0x72   : > { %1102 = vmatpush.bf16.msrb.mxu2 %v1576_v3 }
  0x74   : > { %1115 = vmatpush.bf16.msrb.mxu3 %v1584_v4  ;;  %1077 = vmatpush.bf16.msrb.mxu0 %v1559_v8 }
  0x75   : > { %1090 = vmatpush.bf16.msrb.mxu1 %v1567_v12 }
  0x76   : > { %1103 = vmatpush.bf16.msrb.mxu2 %v1575_v15 }
  0x78   : > { %1116 = vmatpush.bf16.msrb.mxu3 %v1583_v16  ;;  %1078 = vmatpush.bf16.msrb.mxu0 %v1558_v29 }
  0x79   : > { %1091 = vmatpush.bf16.msrb.mxu1 %v1566_v34 }
  0x7a   : > { %1104 = vmatpush.bf16.msrb.mxu2 %v1574_v37 }
  0x7c   : > { %1117 = vmatpush.bf16.msrb.mxu3 %v1582_v38 }
  0xb6   : > { %v2067_v20 = vpop.xlane.xlu0 %313  ;;  %v2073_v25 = vpop.xlane.xlu1 %384 }
  0xb7   : > { %v333_v51 = vmul.f32 %v317_v6, %v2067_v20  ;;  %v334_v55 = vmul.f32 %v318_v7, %v2067_v20  ;;  %v335_v56 = vmul.f32 %v319_v10, %v2067_v20  ;;  %v336_v57 = vmul.f32 %v320_v11, %v2067_v20 }
  0xb8   : > { %v405_v60 = vmul.f32 %v389_v14, %v2073_v25  ;;  %v406_v61 = vmul.f32 %v390_v21, %v2073_v25  ;;  %v407_v62 = vmul.f32 %v391_v22, %v2073_v25  ;;  %v408_v63 = vmul.f32 %v392_v23, %v2073_v25 }
  0xb9   : > { %v337_v14 = vmul.f32 %v321_v13, %v2067_v20  ;;  %v409_v22 = vmul.f32 %v393_v24, %v2073_v25  ;;  %v410_v34 = vmul.f32 %v394_v30, %v2073_v25  ;;  %v339_v13 = vmul.f32 %v323_v18, %v2067_v20 }
  0xba   : > { %v411_v18 = vmul.f32 %v395_v36, %v2073_v25 }
  0xbe   : > { %v345_v59 = vpop.xlane.xlu0 %344  ;;  %v425_v0 = vpop.xlane.xlu1 %424 }
  0xbf   : > { %v365_v1 = vmul.f32 %v349_v26, %v345_v59  ;;  %v366_v3 = vmul.f32 %v350_v28, %v345_v59  ;;  %v367_v4 = vmul.f32 %v351_v32, %v345_v59  ;;  %v368_v6 = vmul.f32 %v352_v33, %v345_v59 }
  0xc0   : > { %v445_v7 = vmul.f32 %v429_v43, %v425_v0  ;;  %v446_v8 = vmul.f32 %v430_v44, %v425_v0  ;;  %v447_v9 = vmul.f32 %v431_v45, %v425_v0  ;;  %v448_v10 = vmul.f32 %v432_v46, %v425_v0 }
  0xc1   : > { %v373_v11 = vadd.f32 %v365_v1, %v333_v51  ;;  %v374_v12 = vadd.f32 %v366_v3, %v334_v55  ;;  %v375_v15 = vadd.f32 %v367_v4, %v335_v56  ;;  %v376_v16 = vadd.f32 %v368_v6, %v336_v57 }
  0xc2   : > { %v369_v21 = vmul.f32 %v353_v35, %v345_v59  ;;  %v370_v23 = vmul.f32 %v354_v39, %v345_v59  ;;  %v338_v33 = vmul.f32 %v322_v17, %v2067_v20  ;;  %v371_v35 = vmul.f32 %v355_v40, %v345_v59 }
  0xc3   : > { %v413_v26 = vadd.f32 %v405_v60, %v373_v11  ;;  %v414_v28 = vadd.f32 %v406_v61, %v374_v12  ;;  %v415_v29 = vadd.f32 %v407_v62, %v375_v15  ;;  %v416_v32 = vadd.f32 %v408_v63, %v376_v16 }
  0xc4   : > { %v377_v43 = vadd.f32 %v369_v21, %v337_v14  ;;  %v378_v44 = vadd.f32 %v370_v23, %v338_v33  ;;  %v340_v45 = vmul.f32 %v324_v19, %v2067_v20  ;;  %v372_v17 = vmul.f32 %v356_v41, %v345_v59 }
  0xc5   : > { %v453_v37 = vadd.f32 %v445_v7, %v413_v26  ;;  %v454_v24 = vadd.f32 %v446_v8, %v414_v28  ;;  %v455_v38 = vadd.f32 %v447_v9, %v415_v29  ;;  %v456_v39 = vadd.f32 %v448_v10, %v416_v32 }
  0xc6   : > { %v379_v56 = vadd.f32 %v371_v35, %v339_v13  ;;  %v380_v40 = vadd.f32 %v372_v17, %v340_v45  ;;  %v412_v57 = vmul.f32 %v396_v42, %v2073_v25  ;;  %v417_v19 = vadd.f32 %v409_v22, %v377_v43 }
  0xc7   : > { %v479_v46 = vadd.f32 %v463_v47, %v453_v37  ;;  %v480_v51 = vadd.f32 %v464_v48, %v454_v24  ;;  %v481_v55 = vadd.f32 %v465_v52, %v455_v38  ;;  %v482_v30 = vadd.f32 %v466_v53, %v456_v39 }
  0xc8   : > { %v449_v20 = vmul.f32 %v433_v49, %v425_v0  ;;  %v418_v41 = vadd.f32 %v410_v34, %v378_v44  ;;  %v450_v47 = vmul.f32 %v434_v50, %v425_v0  ;;  %v419_v59 = vadd.f32 %v411_v18, %v379_v56 }
  0xc9   : > { %v487_v60 = vmax.f32 %v479_v46, 0.0  ;;  %v488_v61 = vmax.f32 %v480_v51, 0.0  ;;  %v489_v62 = vmax.f32 %v481_v55, 0.0  ;;  %v490_v2 = vmax.f32 %v482_v30, 0.0 }
  0xca   : > { %v451_v5 = vmul.f32 %v435_v54, %v425_v0  ;;  %v420_v25 = vadd.f32 %v412_v57, %v380_v40  ;;  %v452_v42 = vmul.f32 %v436_v58, %v425_v0  ;;  %v457_v63 = vadd.f32 %v449_v20, %v417_v19 }
  0xcb   : > { %v495_v48 = vpack.c.bf16 %v487_v60, %v487_v60  ;;  %v496_v52 = vpack.c.bf16 %v488_v61, %v488_v61  ;;  %v497_v36 = vpack.c.bf16 %v489_v62, %v489_v62  ;;  %v498_v53 = vpack.c.bf16 %v490_v2, %v490_v2 }
  0xcc   : > { %v467_v49 = vperm.slane %v2080_v31, 4  ;;  %v458_v1 = vadd.f32 %v450_v47, %v418_v41  ;;  %v468_v50 = vperm.slane %v2080_v31, 5  ;;  %v459_v3 = vadd.f32 %v451_v5, %v419_v59 }
  0xcd   : > { %1027 = vmatmul.bf16.vlgmr.msra.gmra.mxu0 %v495_v48  ;;  %1040 = vmatmul.bf16.vlgmr.msra.gmra.mxu1 %v496_v52  ;;  %v469_v4 = vperm.slane %v2080_v31, 6  ;;  %v460_v6 = vadd.f32 %v452_v42, %v420_v25  ;;  %v470_v7 = vperm.slane %v2080_v31, 7  ;;  %v1686_v31 = vld [vmem:[%s2176_s4] ss:$0 sm:$0xff] }
  0xce   : > { %1053 = vmatmul.bf16.vlgmr.msra.gmra.mxu2 %v497_v36  ;;  %1066 = vmatmul.bf16.vlgmr.msra.gmra.mxu3 %v498_v53  ;;  %v483_v27 = vadd.f32 %v467_v49, %v457_v63  ;;  %v484_v54 = vadd.f32 %v468_v50, %v458_v1 }
  0xcf   : > { %v485_v8 = vadd.f32 %v469_v4, %v459_v3  ;;  %v486_v58 = vadd.f32 %v470_v7, %v460_v6 }
  0xd0   : > { %v491_v0 = vmax.f32 %v483_v27, 0.0  ;;  %v492_v9 = vmax.f32 %v484_v54, 0.0 }
  0xd1   : > { %v493_v10 = vmax.f32 %v485_v8, 0.0  ;;  %v494_v11 = vmax.f32 %v486_v58, 0.0 }
  0xd2   : > { %v499_v12 = vpack.c.bf16 %v491_v0, %v491_v0  ;;  %v500_v15 = vpack.c.bf16 %v492_v9, %v492_v9 }
  0xd3   : > { %v501_v16 = vpack.c.bf16 %v493_v10, %v493_v10  ;;  %v502_v14 = vpack.c.bf16 %v494_v11, %v494_v11 }
  0xdd   : > { %1079 = vmatmul.bf16.vlgmr.msrb.gmra.mxu0 %v499_v12  ;;  %1092 = vmatmul.bf16.vlgmr.msrb.gmra.mxu1 %v500_v15 }
  0xde   : > { %1105 = vmatmul.bf16.vlgmr.msrb.gmra.mxu2 %v501_v16  ;;  %1118 = vmatmul.bf16.vlgmr.msrb.gmra.mxu3 %v502_v14 }
 0x14a   : > { %v1028_v21 = vpop.f32.mrf.mxu0  ;;  %v1041_v22 = vpop.f32.mrf.mxu1 }
 0x14b   : > { %v1029_v23 = vadd.f32 %v1686_v31, %v1028_v21 }
 0x14d   : > { %v1042_v33 = vadd.f32 %v1041_v22, %v1029_v23 }
 0x151   : > { %v1054_v26 = vpop.f32.mrf.mxu2  ;;  %v1067_v28 = vpop.f32.mrf.mxu3 }
 0x152   : > { %v1030_v29 = vpop.f32.mrf.mxu0  ;;  %v1043_v32 = vpop.f32.mrf.mxu1  ;;  %v1055_v34 = vadd.f32 %v1054_v26, %v1042_v33 }
 0x154   : > { %v1068_v37 = vadd.f32 %v1067_v28, %v1055_v34 }
 0x159   : > { %v1056_v13 = vpop.f32.mrf.mxu2  ;;  %v1069_v35 = vpop.f32.mrf.mxu3 }
 0x15a   : > { %v1080_v24 = vpop.f32.mrf.mxu0  ;;  %v1093_v38 = vpop.f32.mrf.mxu1 }
 0x15b   : > { %v1081_v39 = vadd.f32 %v1080_v24, %v1068_v37 }
 0x15d   : > { %v1094_v43 = vadd.f32 %v1093_v38, %v1081_v39 }
 0x161   : > { %v1106_v44 = vpop.f32.mrf.mxu2  ;;  %v1119_v45 = vpop.f32.mrf.mxu3 }
 0x162   : > { %v1107_v17 = vadd.f32 %v1106_v44, %v1094_v43  ;;  %v1082_v46 = vpop.f32.mrf.mxu0  ;;  %v1095_v51 = vpop.f32.mrf.mxu1 }
 0x164   : > { %v1120_v55 = vadd.f32 %v1119_v45, %v1107_v17 }
 0x166   : > { %v1123_v30 = vsel %vm311_vm0, %v1120_v55, -inf }
 0x167   : > { %1124 = vmax.xlane.f32.xlu2 %v1123_v30 }
 0x169   : > { %v1108_v56 = vpop.f32.mrf.mxu2  ;;  %v1121_v18 = vpop.f32.mrf.mxu3 }
 0x1da   : > { %v1125_v40 = vpop.xlane.xlu2 %1124 }
 0x1db   : > { %v1126_v57 = vsub.f32 %v1120_v55, %v1125_v40 }
 0x1dd   : > { %v1127_v60 = vmul.f32 1.442695, %v1126_v57 }
 0x1df   : > { %1687 = vpow2.f32 %v1127_v60 }
 0x1e5   : > { %v1688_v61 = vpop.eup %1687 }
 0x1e6   : > { %v1129_v62 = vsel %vm311_vm0, %v1688_v61, 0.0 }
 0x1e7   : > { %1130 = vadd.xlane.f32.xlu2 %v1129_v62 }
 0x25a   : > { %v1131_v2 = vpop.xlane.xlu2 %1130 }
 0x25b   : > { %1689 = vrcp.f32 %v1131_v2  ;;  %v1143_v47 = vand.u32 2147483648, %v1131_v2  ;;  %v1141_v52 = vand.u32 2147483647, %v1131_v2  ;;  %vm1137_vm2 = vweird.f32 %v1131_v2 }
 0x25d   : > { %v1144_v53 = vor.u32 1.1754944e-38, %v1143_v47  ;;  %vm1142_vm4 = vcmp.eq.f32.partialorder %v1141_v52, 8.507059e+37 }
 0x261   : > { %v1690_v19 = vpop.eup %1689 }
 0x262   : > { %v1133_v20 = vmul.f32 %v1690_v19, %v1131_v2  ;;  %vm1138_vm1 = vweird.f32 %v1690_v19 }
 0x263   : > { %vm1139_vm3 = vmor %vm1137_vm2, %vm1138_vm1 }
 0x264   : > { %v1134_v41 = vsub.f32 1.0, %v1133_v20 }
 0x266   : > { %v1135_v48 = vmul.f32 %v1690_v19, %v1134_v41 }
 0x268   : > { %v1136_v36 = vadd.f32 %v1690_v19, %v1135_v48 }
 0x26a   : > { %v1140_v59 = vsel %vm1139_vm3, %v1690_v19, %v1136_v36 }
 0x26b   : > { %v1145_v5 = vsel %vm1142_vm4, %v1144_v53, %v1140_v59 }
 0x26c   : > { %v1146_v25 = vmul.f32 %v1688_v61, %v1145_v5 }
 0x26e   : > { %1147 = vst [vmem:[#allocation11] sm:$0x3] %v1146_v25 }
 0x26f PF: > { %p1629_p1 = scmp.eq.s32.totalorder %s1251_s24, 1  ;;  %s1158_s29 = sshll.u32 %s2177_s5, 4  ;;  %s1159_s29 = int_to_ptr.hbm [resolvable:$true] %s1158_s29 }
 0x270   : > { %s1909_s9 = smov [#allocation11]  }
 0x271   : > { %s1156_s10 = sshll.u32 %s1909_s9, 4  ;;  %s1157_s10 = int_to_ptr.vmem [resolvable:$true] %s1156_s10 }
 0x272   : > { %1605 = dma.vmem_to_hbm [thread:$0]  (%p1629_p1), %s1157_s10, 32, %s1159_s29, [#allocation5]  }
 0x273   : > { %1876 = dma.done.wait (%p1629_p1), [#allocation5], 32  }
 0x274   : > { %1878 = vsyncadd (%p1629_p1), [#allocation5], 4294967264 }
 0x275 PF: > { %s21_s23 = sadd.s32 1, %s1901_s23   ;;  %s2182_s18 = smov %s1885_s19 }
 0x276   : > { %p18_p4 = scmp.ge.s32.totalorder %s21_s23, 4   ;;  %s2183_s19 = smov %s1889_s20 }
 0x277   : > { %s2184_s20 = smov %s2024_s13  ;;  %s2185_s21 = smov %s1897_s22 }
 0x278   : > { %s2186_s22 = smov %s2188_s8  ;;  %20 = sbr.rel (!%p18_p4) target bundleno = 7 (0x7), region = 104 }
 0x27d   :  { %1172 = vsyncpa [#allocation4], 1 }
 0x27e   :  { %1174 = vsyncpa [#allocation4 + $0x1], 1 }
 0x27f   :  { %1175 = vsyncpa [#allocation7], 1 }
 0x280   :  { %1176 = vsyncpa [#allocation10], 1 }
 0x281   :  { %1177 = vsyncpa [#allocation5], 1 }
 0x282   :  { %1179 = vsyncpa [#allocation5 + $0x1], 1 }

</bundles_post_ra>
